<compile_context>
chip_gen: v6e
topology: v6e:2x2x1
jax: 0.10.0
libtpu: 0.0.40
codegen_flags: <defaults>
</compile_context>

<pallas_src>
import functools

import jax
import jax.numpy as jnp
from jax.experimental import pallas as pl
from jax.experimental.pallas import tpu as pltpu

OTHER = 1.0          # self.other in the PyTorch module
CIN, COUT = 3, 8     # Conv2d(3, 8, kernel_size=1)
PAD = 1              # padding=1


def _conv1x1_add_kernel(x_ref, w_ref, b_ref, o_ref, *, nb, cin, cout):
    # x_ref: (nb*cin, Mp)  VMEM, channel-major, Mp lane-dense (multiple of 128)
    # w_ref: (cout, cin)   VMEM
    # b_ref: (cout, 1)     VMEM (bias + other already folded)
    # o_ref: (nb*cout, Mp) VMEM
    w = w_ref[...]                                   # hoisted: loaded once per step
    b = b_ref[...]
    for s in range(nb):                              # static unroll, nb is small
        # Dense (cout, Mp) accumulator: each term is one input-channel row
        # (sublane-broadcast) times a lane-broadcast (cout, 1) weight column.
        acc = b + w[:, 0:1] * x_ref[pl.ds(s * cin, 1), :]
        for ci in range(1, cin):
            acc = acc + w[:, ci:ci + 1] * x_ref[pl.ds(s * cin + ci, 1), :]
        o_ref[pl.ds(s * cout, cout), :] = acc        # one unmasked dense store


def _samples_per_block(n, mp_pad):
    """Largest batch block that keeps (double-buffered) blocks well under VMEM."""
    per_sample = (CIN + COUT) * mp_pad * 4 * 2       # in+out bytes, x2 for pipelining
    budget = 16 * 1024 * 1024
    if n * per_sample <= budget:
        return n                                     # single block (gridless-like)
    best = None
    for nb in range(8, n, 8):                        # keeps nb*CIN, nb*COUT % 8 == 0
        if n % nb == 0 and nb * per_sample <= budget:
            best = nb
    return best if best is not None else n


def conv1x1_pad1_add(x_nchw, weight, bias, other=OTHER):
    """x_nchw: (N, CIN, H, W) f32. weight: (COUT, CIN, 1, 1). bias: (COUT,)."""
    n, cin, h, w = x_nchw.shape
    assert cin == CIN
    hp, wp = h + 2 * PAD, w + 2 * PAD
    mp = hp * wp
    mp_pad = ((mp + 127) // 128) * 128               # lane-exact last dim

    # Spatial zero-pad (padding=1). Zero inputs -> border output = bias+other,
    # exactly PyTorch's padded 1x1-conv semantics.
    x_pad = jnp.pad(x_nchw.astype(jnp.float32),
                    ((0, 0), (0, 0), (PAD, PAD), (PAD, PAD)))
    # Channel-major flatten: NCHW memory order preserved, no transpose.
    x_flat = x_pad.reshape(n * CIN, mp)
    if mp_pad != mp:
        x_flat = jnp.pad(x_flat, ((0, 0), (0, mp_pad - mp)))

    w_mat = weight.reshape(COUT, CIN).astype(jnp.float32)            # (COUT, CIN)
    b_col = bias.astype(jnp.float32).reshape(COUT, 1) + jnp.float32(other)

    nb = _samples_per_block(n, mp_pad)
    num_blocks = n // nb

    kernel = functools.partial(_conv1x1_add_kernel, nb=nb, cin=CIN, cout=COUT)

    out_flat = pl.pallas_call(
        kernel,
        out_shape=jax.ShapeDtypeStruct((n * COUT, mp_pad), jnp.float32),
        grid=(num_blocks,),
        in_specs=[
            pl.BlockSpec((nb * CIN, mp_pad), lambda i: (i, 0)),          # x
            pl.BlockSpec(memory_space=pltpu.MemorySpace.VMEM),           # W (whole)
            pl.BlockSpec(memory_space=pltpu.MemorySpace.VMEM),           # b (whole)
        ],
        out_specs=pl.BlockSpec((nb * COUT, mp_pad), lambda i: (i, 0)),
        compiler_params=pltpu.CompilerParams(
            dimension_semantics=("parallel",)),
    )(x_flat, w_mat, b_col)

    # Drop lane padding; channel-major -> NCHW is a pure reshape (no transpose).
    return out_flat[:, :mp].reshape(n, COUT, hp, wp)


if __name__ == "__main__":
    key = jax.random.PRNGKey(0)
    kx, kw, kb = jax.random.split(key, 3)

    # Input consistent with the module: (1, 3, 64, 64)
    x = jax.random.normal(kx, (1, 3, 64, 64), dtype=jnp.float32)
    weight = jax.random.normal(kw, (COUT, CIN, 1, 1), dtype=jnp.float32) * 0.1
    bias = jax.random.normal(kb, (COUT,), dtype=jnp.float32) * 0.1

    out = conv1x1_pad1_add(x, weight, bias)
    out = jax.block_until_ready(out)

    # Reference: padded 1x1 conv == pad + channel matmul, then + bias + other.
    x_pad = jnp.pad(x, ((0, 0), (0, 0), (1, 1), (1, 1)))
    ref = jnp.einsum("nchw,oc->nohw", x_pad, weight.reshape(COUT, CIN))
    ref = ref + bias[None, :, None, None] + OTHER

    assert out.shape == (1, 8, 66, 66), out.shape
    assert jnp.allclose(out, ref, atol=1e-4, rtol=1e-4)

    print("KERNEL_OK")
</pallas_src>

<mosaic_0001>
module attributes {stable_mosaic.version = 11 : i64} {
  func.func @_conv1x1_add_kernel(%arg0: i32, %arg1: memref<3x4480xf32, #tpu.memory_space<vmem>>, %arg2: memref<8x3xf32, #tpu.memory_space<vmem>>, %arg3: memref<8x1xf32, #tpu.memory_space<vmem>>, %arg4: memref<8x4480xf32, #tpu.memory_space<vmem>>) attributes {dimension_semantics = [#tpu.dimension_semantics<parallel>], iteration_bounds = array<i64: 1>, scalar_prefetch = 0 : i64, scratch_operands = 0 : i64, tpu.core_type = #tpu.core_type<tc>, window_params = [{transform_indices = @transform_0, window_bounds = array<i64: 3, 4480>}, {pipeline_mode = #tpu.pipeline_mode<synchronous>, transform_indices = @transform_1, window_bounds = array<i64: 8, 3>}, {pipeline_mode = #tpu.pipeline_mode<synchronous>, transform_indices = @transform_2, window_bounds = array<i64: 8, 1>}, {transform_indices = @transform_3, window_bounds = array<i64: 8, 4480>}]} {
    %c0 = arith.constant 0 : index
    %c0_0 = arith.constant 0 : index
    %0 = vector.load %arg2[%c0, %c0_0] : memref<8x3xf32, #tpu.memory_space<vmem>>, vector<8x3xf32>
    %c0_1 = arith.constant 0 : index
    %c0_2 = arith.constant 0 : index
    %1 = vector.load %arg3[%c0_1, %c0_2] : memref<8x1xf32, #tpu.memory_space<vmem>>, vector<8x1xf32>
    %2 = vector.extract_strided_slice %0 {offsets = [0, 0], sizes = [8, 1], strides = [1, 1]} : vector<8x3xf32> to vector<8x1xf32>
    %c0_3 = arith.constant 0 : index
    %c0_4 = arith.constant 0 : index
    %3 = vector.load %arg1[%c0_3, %c0_4] : memref<3x4480xf32, #tpu.memory_space<vmem>>, vector<1x4480xf32>
    %4 = vector.broadcast %2 : vector<8x1xf32> to vector<8x4480xf32>
    %5 = vector.broadcast %3 : vector<1x4480xf32> to vector<8x4480xf32>
    %6 = arith.mulf %4, %5 : vector<8x4480xf32>
    %7 = vector.broadcast %1 : vector<8x1xf32> to vector<8x4480xf32>
    %8 = arith.addf %7, %6 : vector<8x4480xf32>
    %9 = vector.extract_strided_slice %0 {offsets = [0, 1], sizes = [8, 1], strides = [1, 1]} : vector<8x3xf32> to vector<8x1xf32>
    %c1 = arith.constant 1 : index
    %c0_5 = arith.constant 0 : index
    %10 = vector.load %arg1[%c1, %c0_5] : memref<3x4480xf32, #tpu.memory_space<vmem>>, vector<1x4480xf32>
    %11 = vector.broadcast %9 : vector<8x1xf32> to vector<8x4480xf32>
    %12 = vector.broadcast %10 : vector<1x4480xf32> to vector<8x4480xf32>
    %13 = arith.mulf %11, %12 : vector<8x4480xf32>
    %14 = arith.addf %8, %13 : vector<8x4480xf32>
    %15 = vector.extract_strided_slice %0 {offsets = [0, 2], sizes = [8, 1], strides = [1, 1]} : vector<8x3xf32> to vector<8x1xf32>
    %c2 = arith.constant 2 : index
    %c0_6 = arith.constant 0 : index
    %16 = vector.load %arg1[%c2, %c0_6] : memref<3x4480xf32, #tpu.memory_space<vmem>>, vector<1x4480xf32>
    %17 = vector.broadcast %15 : vector<8x1xf32> to vector<8x4480xf32>
    %18 = vector.broadcast %16 : vector<1x4480xf32> to vector<8x4480xf32>
    %19 = arith.mulf %17, %18 : vector<8x4480xf32>
    %20 = arith.addf %14, %19 : vector<8x4480xf32>
    %c0_7 = arith.constant 0 : index
    %c0_8 = arith.constant 0 : index
    %21 = vector.load %arg4[%c0_7, %c0_8] : memref<8x4480xf32, #tpu.memory_space<vmem>>, vector<8x4480xf32>
    tpu.vector_store %arg4[%c0_7, %c0_8], %20 {strides = array<i32>} : memref<8x4480xf32, #tpu.memory_space<vmem>>, vector<8x4480xf32>,
    return
  }
  func.func @transform_0(%arg0: i32) -> (i32, i32) {
    %c0_i32 = arith.constant 0 : i32
    %c0_i32_0 = arith.constant 0 : i32
    return %arg0, %c0_i32 : i32, i32
  }
  func.func @transform_1(%arg0: i32) -> (i32, i32) {
    %c0_i32 = arith.constant 0 : i32
    %c0_i32_0 = arith.constant 0 : i32
    %c0_i32_1 = arith.constant 0 : i32
    return %c0_i32, %c0_i32_0 : i32, i32
  }
  func.func @transform_2(%arg0: i32) -> (i32, i32) {
    %c0_i32 = arith.constant 0 : i32
    %c0_i32_0 = arith.constant 0 : i32
    %c0_i32_1 = arith.constant 0 : i32
    return %c0_i32, %c0_i32_0 : i32, i32
  }
  func.func @transform_3(%arg0: i32) -> (i32, i32) {
    %c0_i32 = arith.constant 0 : i32
    %c0_i32_0 = arith.constant 0 : i32
    return %arg0, %c0_i32 : i32, i32
  }
}

</mosaic_0001>

<bundles_post_ra>
// kernel: tpu_custom_call.1
= control target key start
LH: loop header
LB: loop body
LE: loop exit
PB: predicated region body
PF: predicated region fallthrough
CT: control target
= control target key end

     0   :  { %8 = vsyncpa [#allocation3], 0  ;;  %s1852_s0 = inlined_call_operand.hbm [shape: f32[3,4480], index: 0, kind: input, shape index: {}]   ;;  %s1853_s1 = inlined_call_operand.vmem [shape: f32[8,3], index: 1, kind: input, shape index: {}]   ;;  %s1854_s2 = inlined_call_operand.vmem [shape: f32[8,1], index: 2, kind: input, shape index: {}]   ;;  %s1855_s3 = inlined_call_operand.hbm [shape: f32[8,4480], index: 3, kind: output, shape index: {}]  }
   0x1   :  { %9 = vsyncpa [#allocation4], 0  ;;  %s929_s12 = smov [#allocation2]  }
   0x2   :  { %s16_s13 = sshll.u32 %s929_s12, 4  ;;  %s17_s13 = int_to_ptr.vmem [resolvable:$true] %s16_s13 }
   0x3   :  { %s893_s14 = scalar_lea.vmem %s17_s13, 2240  ;;  %p898_p1 = scmp.lt.s32.totalorder %s17_s13, %s17_s13 }
   0x4   :  { %p894_p0 = scmp.ne.s32.totalorder %s17_s13, %s893_s14  ;;  %p899_p2 = scmp.lt.s32.totalorder %s893_s14, %s893_s14 }
   0x6   :  { %p900_p3 = por %p899_p2, %p898_p1 }
   0x8   :  { %p901_p4 = pnand %p900_p3, %p894_p0 }
   0xa   :  { %904 = shalt.err (!%p901_p4)
}
   0xb   :  { %19 = dma.hbm_to_vmem [thread:$0]  %s1852_s0, 2240, %s17_s13, [#allocation3]  }
   0xc   :  { %925 = dma.done.wait [#allocation3], 2240  }
   0xd   :  { %926 = vsyncadd [#allocation3], 4294965056  ;;  %v930_v0 = vmov 0   ;;  %v931_v1 = vmov 1   ;;  %v27_v2 = vld [vmem:[%s1853_s1] sm:$0xff]  ;;  %v932_v4 = vmov 2   ;;  %v48_v5 = vlaneseq }
   0xe   :  { %881 = vset.pattern.permute.xlu0 %v930_v0  ;;  %882 = vset.pattern.permute.xlu1 %v931_v1  ;;  %v28_v3 = vld [vmem:[%s1854_s2] sm:$0xff]  ;;  %s933_s0 = smov [#allocation5]  }
   0xf   :  { %40 = vperm.xlu0 %881, %v27_v2   ;;  %309 = vperm.xlu1 %882, %v27_v2   ;;  %v49_v6 = vshrl.u32 %v48_v5, 7  ;;  %v965_v8 = vld [vmem:[#allocation2] ss:$4 sm:$0xff]  ;;  %v1039_v45 = vld [vmem:[#allocation2 + $0x1] ss:$4 sm:$0xff]  ;;  %s867_s1 = sshll.u32 %s933_s0, 4  ;;  %s868_s1 = int_to_ptr.vmem [resolvable:$true] %s867_s1 }
  0x10   :  { %v981_v16 = vld [vmem:[#allocation2 + $0x20] ss:$4 sm:$0xff]  ;;  %v1057_v54 = vld [vmem:[#allocation2 + $0x21] ss:$4 sm:$0xff]  ;;  %v1121_v61 = vld [vmem:[#allocation2 + $0x2] ss:$4 sm:$0xff]  ;;  %p910_p6 = scmp.lt.s32.totalorder %s868_s1, %s868_s1 }
  0x11   :  { %v963_v7 = vsub.s32 0, %v49_v6  ;;  %v967_v9 = vsub.s32 1, %v49_v6  ;;  %v969_v10 = vsub.s32 2, %v49_v6  ;;  %v971_v11 = vsub.s32 3, %v49_v6  ;;  %v985_v18 = vld [vmem:[#allocation2 + $0x40] ss:$4 sm:$0xff] }
  0x12   :  { %v973_v12 = vsub.s32 4, %v49_v6  ;;  %v975_v13 = vsub.s32 5, %v49_v6  ;;  %v977_v14 = vsub.s32 6, %v49_v6  ;;  %v979_v15 = vsub.s32 7, %v49_v6  ;;  %v1003_v27 = vld [vmem:[#allocation2 + $0x60] ss:$4 sm:$0xff] }
  0x13   :  { %260 = vperm.xlu0 %881, %v28_v3   ;;  %883 = vset.pattern.permute.xlu1 %v932_v4  ;;  %1880 = vst [vmem:[#allocation8_spill] sm:$0xff] %v963_v7  ;;  %1881 = vst [vmem:[#allocation9_spill] sm:$0xff] %v967_v9  ;;  %v51_v17 = vrot.slane %v965_v8, %v963_v7  ;;  %v55_v19 = vrot.slane %v965_v8, %v967_v9  ;;  %v1021_v36 = vld [vmem:[#allocation2 + $0x80] ss:$4 sm:$0x7]  ;;  %s905_s2 = scalar_lea.vmem %s868_s1, 4480 }
  0x14   :  { %573 = vperm.xlu1 %883, %v27_v2   ;;  %1882 = vst [vmem:[#allocation10_spill] sm:$0xff] %v971_v11  ;;  %1883 = vst [vmem:[#allocation11_spill] sm:$0xff] %v973_v12  ;;  %v59_v20 = vrot.slane %v965_v8, %v969_v10  ;;  %v63_v21 = vrot.slane %v965_v8, %v971_v11  ;;  %v67_v22 = vrot.slane %v965_v8, %v973_v12  ;;  %v1067_v59 = vld [vmem:[#allocation2 + $0x41] ss:$4 sm:$0xff]  ;;  %v1139_v60 = vld [vmem:[#allocation2 + $0x22] ss:$4 sm:$0xff]  ;;  %p906_p5 = scmp.ne.s32.totalorder %s868_s1, %s905_s2  ;;  %p911_p7 = scmp.lt.s32.totalorder %s905_s2, %s905_s2 }
  0x15   :  { %1884 = vst [vmem:[#allocation12_spill] sm:$0xff] %v975_v13  ;;  %1885 = vst [vmem:[#allocation13_spill] sm:$0xff] %v977_v14  ;;  %v71_v23 = vrot.slane %v965_v8, %v975_v13  ;;  %v75_v24 = vrot.slane %v965_v8, %v977_v14  ;;  %v79_v25 = vrot.slane %v965_v8, %v979_v15  ;;  %v1103_v62 = vld [vmem:[#allocation2 + $0x81] ss:$4 sm:$0x7] }
  0x16   :  { %1886 = vst [vmem:[#allocation14_spill] sm:$0xff] %v979_v15  ;;  %v83_v26 = vrot.slane %v981_v16, %v963_v7  ;;  %v87_v28 = vrot.slane %v981_v16, %v967_v9  ;;  %v91_v29 = vrot.slane %v981_v16, %v969_v10  ;;  %v95_v30 = vrot.slane %v981_v16, %v971_v11  ;;  %v1149_v3 = vld [vmem:[#allocation2 + $0x42] ss:$4 sm:$0xff]  ;;  %p912_p8 = por %p911_p7, %p910_p6 }
  0x17   :  { %884 = vset.pattern.permute.xlu0 %v932_v4  ;;  %v99_v31 = vrot.slane %v981_v16, %v973_v12  ;;  %v103_v32 = vrot.slane %v981_v16, %v975_v13  ;;  %v107_v33 = vrot.slane %v981_v16, %v977_v14  ;;  %v111_v34 = vrot.slane %v981_v16, %v979_v15  ;;  %v1085_v4 = vld [vmem:[#allocation2 + $0x61] ss:$4 sm:$0xff]  ;;  %v1167_v57 = vld [vmem:[#allocation2 + $0x62] ss:$4 sm:$0xff] }
  0x18   :  { %v115_v35 = vrot.slane %v985_v18, %v963_v7  ;;  %v119_v37 = vrot.slane %v985_v18, %v967_v9  ;;  %v123_v38 = vrot.slane %v985_v18, %v969_v10  ;;  %v127_v39 = vrot.slane %v985_v18, %v971_v11  ;;  %1887 = vst [vmem:[#allocation15_spill] sm:$0xff] %v1121_v61  ;;  %v1185_v56 = vld [vmem:[#allocation2 + $0x82] ss:$4 sm:$0x7]  ;;  %p913_p9 = pnand %p912_p8, %p906_p5 }
  0x19   :  { %v131_v40 = vrot.slane %v985_v18, %v973_v12  ;;  %v135_v41 = vrot.slane %v985_v18, %v975_v13  ;;  %v139_v42 = vrot.slane %v985_v18, %v977_v14  ;;  %v143_v43 = vrot.slane %v985_v18, %v979_v15  ;;  %1888 = vst [vmem:[#allocation16_spill] sm:$0xff] %v1139_v60 }
  0x1a   :  { %v147_v44 = vrot.slane %v1003_v27, %v963_v7  ;;  %v151_v46 = vrot.slane %v1003_v27, %v967_v9  ;;  %v155_v47 = vrot.slane %v1003_v27, %v969_v10  ;;  %v159_v48 = vrot.slane %v1003_v27, %v971_v11  ;;  %1889 = vst [vmem:[#allocation17_spill] sm:$0xff] %v1149_v3 }
  0x1b   :  { %v163_v49 = vrot.slane %v1003_v27, %v973_v12  ;;  %v167_v50 = vrot.slane %v1003_v27, %v975_v13  ;;  %v171_v51 = vrot.slane %v1003_v27, %v977_v14  ;;  %v175_v52 = vrot.slane %v1003_v27, %v979_v15  ;;  %1890 = vst [vmem:[#allocation18_spill] sm:$0xff] %v1167_v57 }
  0x1c   :  { %v179_v53 = vrot.slane %v1021_v36, %v963_v7  ;;  %1891 = vst [vmem:[#allocation19_spill] sm:$0xff] %v1185_v56  ;;  %v1894_v27 = vrot.slane %v1039_v45, %v963_v7  ;;  %v1895_v0 = vrot.slane %v1039_v45, %v967_v9  ;;  %v1896_v63 = vrot.slane %v1039_v45, %v969_v10 }
  0x1d   :  { %v1899_v58 = vrot.slane %v1039_v45, %v975_v13  ;;  %v1900_v56 = vrot.slane %v1039_v45, %v977_v14  ;;  %v1901_v57 = vrot.slane %v1039_v45, %v979_v15  ;;  %v1903_v3 = vrot.slane %v1057_v54, %v963_v7 }
  0x1e   :  { %v1905_v60 = vrot.slane %v1057_v54, %v967_v9  ;;  %v1907_v61 = vrot.slane %v1057_v54, %v969_v10 }
  0x8a   :  { %v41_v55 = vpop.permute.xlu0 %40 }
  0x8b   :  { %v1222_v1 = vmul.f32 %v51_v17, %v41_v55  ;;  %v1227_v2 = vmul.f32 %v55_v19, %v41_v55  ;;  %v1232_v5 = vmul.f32 %v59_v20, %v41_v55  ;;  %v1237_v6 = vmul.f32 %v63_v21, %v41_v55 }
  0x8c   :  { %v1242_v17 = vmul.f32 %v67_v22, %v41_v55  ;;  %v1247_v19 = vmul.f32 %v71_v23, %v41_v55  ;;  %v1252_v20 = vmul.f32 %v75_v24, %v41_v55  ;;  %v1257_v21 = vmul.f32 %v79_v25, %v41_v55 }
  0x8d   :  { %v1262_v22 = vmul.f32 %v83_v26, %v41_v55  ;;  %v1267_v23 = vmul.f32 %v87_v28, %v41_v55  ;;  %v1272_v24 = vmul.f32 %v91_v29, %v41_v55  ;;  %v1277_v8 = vmul.f32 %v95_v30, %v41_v55 }
  0x8e   :  { %v1282_v25 = vmul.f32 %v99_v31, %v41_v55  ;;  %v1287_v26 = vmul.f32 %v103_v32, %v41_v55  ;;  %v1292_v28 = vmul.f32 %v107_v33, %v41_v55  ;;  %v1297_v29 = vmul.f32 %v111_v34, %v41_v55  ;;  %v310_v33 = vpop.permute.xlu1 %309 }
  0x8f   :  { %v1302_v30 = vmul.f32 %v115_v35, %v41_v55  ;;  %v1307_v31 = vmul.f32 %v119_v37, %v41_v55  ;;  %v1312_v32 = vmul.f32 %v123_v38, %v41_v55  ;;  %v1317_v16 = vmul.f32 %v127_v39, %v41_v55 }
  0x90   :  { %v1322_v34 = vmul.f32 %v131_v40, %v41_v55  ;;  %v1327_v35 = vmul.f32 %v135_v41, %v41_v55  ;;  %v1332_v37 = vmul.f32 %v139_v42, %v41_v55  ;;  %v1337_v38 = vmul.f32 %v143_v43, %v41_v55 }
  0x91   :  { %v1342_v39 = vmul.f32 %v147_v44, %v41_v55  ;;  %v1347_v40 = vmul.f32 %v151_v46, %v41_v55  ;;  %v1352_v41 = vmul.f32 %v155_v47, %v41_v55  ;;  %v1357_v18 = vmul.f32 %v159_v48, %v41_v55 }
  0x92   :  { %v1362_v42 = vmul.f32 %v163_v49, %v41_v55  ;;  %v1367_v43 = vmul.f32 %v167_v50, %v41_v55  ;;  %v1372_v44 = vmul.f32 %v171_v51, %v41_v55  ;;  %v1377_v46 = vmul.f32 %v175_v52, %v41_v55 }
  0x93   :  { %v1382_v47 = vmul.f32 %v179_v53, %v41_v55  ;;  %v1892_v48 = vrot.slane %v1021_v36, %v967_v9  ;;  %v1893_v50 = vrot.slane %v1021_v36, %v969_v10  ;;  %v1397_v52 = vmul.f32 %v1894_v27, %v310_v33 }
  0x94   :  { %v1402_v53 = vmul.f32 %v1895_v0, %v310_v33  ;;  %v1897_v36 = vrot.slane %v1039_v45, %v971_v11  ;;  %v1422_v0 = vmul.f32 %v1899_v58, %v310_v33  ;;  %v1442_v58 = vmul.f32 %v1905_v60, %v310_v33 }
  0x95   :  { %v1387_v49 = vmul.f32 %v1892_v48, %v41_v55  ;;  %v1392_v51 = vmul.f32 %v1893_v50, %v41_v55  ;;  %v1407_v48 = vmul.f32 %v1896_v63, %v310_v33  ;;  %v1898_v50 = vrot.slane %v1039_v45, %v973_v12 }
  0x96   :  { %v1412_v55 = vmul.f32 %v1897_v36, %v310_v33  ;;  %v1427_v63 = vmul.f32 %v1900_v56, %v310_v33  ;;  %v1432_v36 = vmul.f32 %v1901_v57, %v310_v33  ;;  %1906 = vst [vmem:[#allocation22_spill] sm:$0xff] %v1442_v58  ;;  %v1447_v56 = vmul.f32 %v1907_v61, %v310_v33 }
  0x97   :  { %v1417_v27 = vmul.f32 %v1898_v50, %v310_v33  ;;  %v1437_v50 = vmul.f32 %v1903_v3, %v310_v33  ;;  %v1909_v45 = vrot.slane %v1057_v54, %v971_v11  ;;  %v1915_v58 = vrot.slane %v1057_v54, %v977_v14 }
  0x98   :  { %1902 = vst [vmem:[#allocation20_spill] sm:$0xff] %v1432_v36  ;;  %1908 = vst [vmem:[#allocation23_spill] sm:$0xff] %v1447_v56  ;;  %v1911_v36 = vrot.slane %v1057_v54, %v973_v12  ;;  %v1916_v56 = vrot.slane %v1057_v54, %v979_v15 }
  0x99   :  { %1904 = vst [vmem:[#allocation21_spill] sm:$0xff] %v1437_v50  ;;  %v1452_v57 = vmul.f32 %v1909_v45, %v310_v33  ;;  %v1913_v50 = vrot.slane %v1057_v54, %v975_v13  ;;  %v1467_v61 = vmul.f32 %v1915_v58, %v310_v33  ;;  %v1924_v54 = vrot.slane %v1067_v59, %v971_v11 }
  0x9a   :  { %v1457_v3 = vmul.f32 %v1911_v36, %v310_v33  ;;  %v1472_v45 = vmul.f32 %v1916_v56, %v310_v33 }
  0x9b   :  { %1910 = vst [vmem:[#allocation24_spill] sm:$0xff] %v1452_v57  ;;  %v1462_v60 = vmul.f32 %v1913_v50, %v310_v33  ;;  %v1918_v57 = vrot.slane %v1067_v59, %v963_v7  ;;  %v1492_v56 = vmul.f32 %v1924_v54, %v310_v33 }
  0x9c   :  { %1912 = vst [vmem:[#allocation25_spill] sm:$0xff] %v1457_v3  ;;  %1917 = vst [vmem:[#allocation27_spill] sm:$0xff] %v1472_v45  ;;  %v1920_v3 = vrot.slane %v1067_v59, %v967_v9  ;;  %v1926_v45 = vrot.slane %v1067_v59, %v973_v12 }
  0x9d   :  { %1914 = vst [vmem:[#allocation26_spill] sm:$0xff] %v1462_v60  ;;  %v1477_v36 = vmul.f32 %v1918_v57, %v310_v33  ;;  %v1922_v60 = vrot.slane %v1067_v59, %v969_v10  ;;  %1925 = vst [vmem:[#allocation31_spill] sm:$0xff] %v1492_v56  ;;  %v1934_v56 = vrot.slane %v1085_v4, %v963_v7 }
  0x9e   :  { %v1482_v50 = vmul.f32 %v1920_v3, %v310_v33  ;;  %v1497_v57 = vmul.f32 %v1926_v45, %v310_v33 }
  0x9f   :  { %1919 = vst [vmem:[#allocation28_spill] sm:$0xff] %v1477_v36  ;;  %v1487_v58 = vmul.f32 %v1922_v60, %v310_v33  ;;  %v1928_v36 = vrot.slane %v1067_v59, %v975_v13  ;;  %v1517_v45 = vmul.f32 %v1934_v56, %v310_v33  ;;  %v1940_v56 = vrot.slane %v1085_v4, %v973_v12 }
  0xa0   :  { %1921 = vst [vmem:[#allocation29_spill] sm:$0xff] %v1482_v50  ;;  %1927 = vst [vmem:[#allocation32_spill] sm:$0xff] %v1497_v57  ;;  %v1930_v50 = vrot.slane %v1067_v59, %v977_v14  ;;  %v261_v57 = vpop.permute.xlu0 %260  ;;  %v1945_v12 = vrot.slane %v1103_v62, %v963_v7 }
  0xa1   :  { %1923 = vst [vmem:[#allocation30_spill] sm:$0xff] %v1487_v58  ;;  %v1502_v3 = vmul.f32 %v1928_v36, %v310_v33  ;;  %v1932_v58 = vrot.slane %v1067_v59, %v979_v15  ;;  %1935 = vst [vmem:[#allocation36_spill] sm:$0xff] %v1517_v45  ;;  %v1936_v36 = vrot.slane %v1085_v4, %v967_v9 }
  0xa2   :  { %v1507_v60 = vmul.f32 %v1930_v50, %v310_v33  ;;  %v1938_v50 = vrot.slane %v1085_v4, %v969_v10  ;;  %v1939_v59 = vrot.slane %v1085_v4, %v971_v11  ;;  %v1537_v45 = vmul.f32 %v1940_v56, %v310_v33 }
  0xa3   :  { %1929 = vst [vmem:[#allocation33_spill] sm:$0xff] %v1502_v3  ;;  %v1512_v54 = vmul.f32 %v1932_v58, %v310_v33  ;;  %v1522_v3 = vmul.f32 %v1936_v36, %v310_v33  ;;  %v1944_v11 = vrot.slane %v1085_v4, %v979_v15  ;;  %v1557_v56 = vmul.f32 %v1945_v12, %v310_v33 }
  0xa4   :  { %1931 = vst [vmem:[#allocation34_spill] sm:$0xff] %v1507_v60  ;;  %v1527_v60 = vmul.f32 %v1938_v50, %v310_v33  ;;  %v1532_v58 = vmul.f32 %v1939_v59, %v310_v33  ;;  %v266_v15 = vadd.f32 %v261_v57, %v1237_v6  ;;  %v267_v12 = vadd.f32 %v261_v57, %v1242_v17 }
  0xa5   :  { %1933 = vst [vmem:[#allocation35_spill] sm:$0xff] %v1512_v54  ;;  %1937 = vst [vmem:[#allocation37_spill] sm:$0xff] %v1522_v3  ;;  %v1941_v54 = vrot.slane %v1085_v4, %v975_v13  ;;  %v1942_v3 = vrot.slane %v1085_v4, %v977_v14  ;;  %v1552_v59 = vmul.f32 %v1944_v11, %v310_v33 }
  0xa6   :  { %v1946_v13 = vrot.slane %v1103_v62, %v967_v9  ;;  %v1947_v14 = vrot.slane %v1103_v62, %v969_v10  ;;  %v264_v11 = vadd.f32 %v261_v57, %v1227_v2  ;;  %v265_v4 = vadd.f32 %v261_v57, %v1232_v5 }
  0xa7   :  { %v1542_v36 = vmul.f32 %v1941_v54, %v310_v33  ;;  %v1547_v50 = vmul.f32 %v1942_v3, %v310_v33  ;;  %v268_v7 = vadd.f32 %v261_v57, %v1247_v19  ;;  %v270_v9 = vadd.f32 %v261_v57, %v1257_v21 }
  0xa8   :  { %v1562_v54 = vmul.f32 %v1946_v13, %v310_v33  ;;  %v1567_v3 = vmul.f32 %v1947_v14, %v310_v33  ;;  %v269_v13 = vadd.f32 %v261_v57, %v1252_v20  ;;  %v271_v62 = vadd.f32 %v261_v57, %v1262_v22 }
  0xa9   :  { %1943 = vst [vmem:[#allocation38_spill] sm:$0xff] %v1547_v50  ;;  %v263_v50 = vadd.f32 %v261_v57, %v1222_v1  ;;  %v272_v14 = vadd.f32 %v261_v57, %v1267_v23  ;;  %v273_v1 = vadd.f32 %v261_v57, %v1272_v24  ;;  %v274_v2 = vadd.f32 %v261_v57, %v1277_v8 }
  0xaa   :  { %v275_v5 = vadd.f32 %v261_v57, %v1282_v25  ;;  %v276_v6 = vadd.f32 %v261_v57, %v1287_v26  ;;  %v277_v17 = vadd.f32 %v261_v57, %v1292_v28  ;;  %v278_v19 = vadd.f32 %v261_v57, %v1297_v29 }
  0xab   :  { %v279_v20 = vadd.f32 %v261_v57, %v1302_v30  ;;  %v280_v21 = vadd.f32 %v261_v57, %v1307_v31  ;;  %v281_v22 = vadd.f32 %v261_v57, %v1312_v32  ;;  %v282_v23 = vadd.f32 %v261_v57, %v1317_v16 }
  0xac   :  { %v283_v24 = vadd.f32 %v261_v57, %v1322_v34  ;;  %v284_v8 = vadd.f32 %v261_v57, %v1327_v35  ;;  %v285_v25 = vadd.f32 %v261_v57, %v1332_v37  ;;  %v286_v26 = vadd.f32 %v261_v57, %v1337_v38 }
  0xad   :  { %v287_v28 = vadd.f32 %v261_v57, %v1342_v39  ;;  %v288_v29 = vadd.f32 %v261_v57, %v1347_v40  ;;  %v289_v30 = vadd.f32 %v261_v57, %v1352_v41  ;;  %v290_v31 = vadd.f32 %v261_v57, %v1357_v18 }
  0xae   :  { %v291_v32 = vadd.f32 %v261_v57, %v1362_v42  ;;  %v292_v16 = vadd.f32 %v261_v57, %v1367_v43  ;;  %v293_v33 = vadd.f32 %v261_v57, %v1372_v44  ;;  %v294_v34 = vadd.f32 %v261_v57, %v1377_v46  ;;  %v1948_v46 = vld [vmem:[#allocation20_spill] sm:$0xff] }
  0xaf   :  { %v295_v35 = vadd.f32 %v261_v57, %v1382_v47  ;;  %v296_v37 = vadd.f32 %v261_v57, %v1387_v49  ;;  %v297_v38 = vadd.f32 %v261_v57, %v1392_v51  ;;  %v1605_v39 = vadd.f32 %v1397_v52, %v263_v50  ;;  %v1949_v49 = vld [vmem:[#allocation21_spill] sm:$0xff]  ;;  %v1950_v52 = vld [vmem:[#allocation22_spill] sm:$0xff]  ;;  %v1955_v50 = vld [vmem:[#allocation27_spill] sm:$0xff] }
  0xb0   :  { %v1608_v40 = vadd.f32 %v1402_v53, %v264_v11  ;;  %v1611_v41 = vadd.f32 %v1407_v48, %v265_v4  ;;  %v1614_v18 = vadd.f32 %v1412_v55, %v266_v15  ;;  %v1617_v42 = vadd.f32 %v1417_v27, %v267_v12  ;;  %v1951_v15 = vld [vmem:[#allocation23_spill] sm:$0xff]  ;;  %v1952_v55 = vld [vmem:[#allocation24_spill] sm:$0xff] }
  0xb1   :  { %v1620_v43 = vadd.f32 %v1422_v0, %v268_v7  ;;  %v1623_v44 = vadd.f32 %v1427_v63, %v269_v13  ;;  %v1626_v47 = vadd.f32 %v1948_v46, %v270_v9  ;;  %v1629_v51 = vadd.f32 %v1949_v49, %v271_v62  ;;  %v1953_v7 = vld [vmem:[#allocation25_spill] sm:$0xff]  ;;  %v1954_v63 = vld [vmem:[#allocation26_spill] sm:$0xff]  ;;  %v1957_v4 = vld [vmem:[#allocation28_spill] sm:$0xff] }
  0xb2   :  { %v1632_v53 = vadd.f32 %v1950_v52, %v272_v14  ;;  %v1635_v48 = vadd.f32 %v1951_v15, %v273_v1  ;;  %v1638_v27 = vadd.f32 %v1952_v55, %v274_v2  ;;  %v1641_v0 = vadd.f32 %v1953_v7, %v275_v5  ;;  %v1959_v13 = vld [vmem:[#allocation29_spill] sm:$0xff]  ;;  %v1961_v14 = vld [vmem:[#allocation30_spill] sm:$0xff]  ;;  %v1963_v2 = vld [vmem:[#allocation31_spill] sm:$0xff] }
  0xb3   :  { %v1644_v57 = vadd.f32 %v1954_v63, %v276_v6  ;;  %v1647_v9 = vadd.f32 %v1467_v61, %v277_v17  ;;  %v1650_v11 = vadd.f32 %v1955_v50, %v278_v19  ;;  %v1653_v12 = vadd.f32 %v1957_v4, %v279_v20  ;;  %v1965_v6 = vld [vmem:[#allocation32_spill] sm:$0xff]  ;;  %v1967_v61 = vld [vmem:[#allocation33_spill] sm:$0xff]  ;;  %v1969_v19 = vld [vmem:[#allocation34_spill] sm:$0xff] }
  0xb4   :  { %v1656_v62 = vadd.f32 %v1959_v13, %v280_v21  ;;  %v1659_v1 = vadd.f32 %v1961_v14, %v281_v22  ;;  %v1662_v5 = vadd.f32 %v1963_v2, %v282_v23  ;;  %v1665_v46 = vadd.f32 %v1965_v6, %v283_v24  ;;  %v1971_v20 = vld [vmem:[#allocation35_spill] sm:$0xff]  ;;  %v1973_v21 = vld [vmem:[#allocation36_spill] sm:$0xff]  ;;  %v1975_v22 = vld [vmem:[#allocation37_spill] sm:$0xff]  ;;  %v574_v24 = vpop.permute.xlu1 %573 }
  0xb5   :  { %1956 = vst [vmem:[#allocation20_spill] sm:$0xff] %v1650_v11  ;;  %1958 = vst [vmem:[#allocation21_spill] sm:$0xff] %v1653_v12  ;;  %v1668_v17 = vadd.f32 %v1967_v61, %v284_v8  ;;  %v1671_v49 = vadd.f32 %v1969_v19, %v285_v25  ;;  %v1674_v52 = vadd.f32 %v1971_v20, %v286_v26  ;;  %v1981_v26 = vld [vmem:[#allocation38_spill] sm:$0xff]  ;;  %v1997_v50 = vld [vmem:[#allocation12_spill] sm:$0xff] }
  0xb6   :  { %1960 = vst [vmem:[#allocation22_spill] sm:$0xff] %v1656_v62  ;;  %1962 = vst [vmem:[#allocation23_spill] sm:$0xff] %v1659_v1  ;;  %v1677_v15 = vadd.f32 %v1973_v21, %v287_v28  ;;  %v1680_v55 = vadd.f32 %v1975_v22, %v288_v29  ;;  %v1683_v23 = vadd.f32 %v1527_v60, %v289_v30  ;;  %v1988_v30 = vld [vmem:[#allocation8_spill] sm:$0xff]  ;;  %v1999_v14 = vld [vmem:[#allocation13_spill] sm:$0xff] }
  0xb7   :  { %1964 = vst [vmem:[#allocation24_spill] sm:$0xff] %v1662_v5  ;;  %1966 = vst [vmem:[#allocation25_spill] sm:$0xff] %v1665_v46  ;;  %v1686_v7 = vadd.f32 %v1532_v58, %v290_v31  ;;  %v1689_v8 = vadd.f32 %v1537_v45, %v291_v32  ;;  %v1692_v25 = vadd.f32 %v1542_v36, %v292_v16  ;;  %v1987_v45 = vld [vmem:[#allocation15_spill] sm:$0xff]  ;;  %v1990_v32 = vld [vmem:[#allocation9_spill] sm:$0xff] }
  0xb8   :  { %1968 = vst [vmem:[#allocation26_spill] sm:$0xff] %v1668_v17  ;;  %1970 = vst [vmem:[#allocation27_spill] sm:$0xff] %v1671_v49  ;;  %v1695_v63 = vadd.f32 %v1981_v26, %v293_v33  ;;  %v1698_v28 = vadd.f32 %v1552_v59, %v294_v34  ;;  %v1701_v29 = vadd.f32 %v1557_v56, %v295_v35  ;;  %v1993_v56 = vld [vmem:[#allocation10_spill] sm:$0xff]  ;;  %v2003_v21 = vld [vmem:[#allocation16_spill] sm:$0xff] }
  0xb9   :  { %1972 = vst [vmem:[#allocation28_spill] sm:$0xff] %v1674_v52  ;;  %1974 = vst [vmem:[#allocation29_spill] sm:$0xff] %v1677_v15  ;;  %v1704_v60 = vadd.f32 %v1562_v54, %v296_v37  ;;  %v1707_v58 = vadd.f32 %v1567_v3, %v297_v38  ;;  %v1989_v31 = vrot.slane %v1987_v45, %v1988_v30  ;;  %v1995_v37 = vld [vmem:[#allocation11_spill] sm:$0xff]  ;;  %v2001_v61 = vld [vmem:[#allocation14_spill] sm:$0xff] }
  0xba   :  { %1976 = vst [vmem:[#allocation30_spill] sm:$0xff] %v1680_v55  ;;  %1977 = vst [vmem:[#allocation31_spill] sm:$0xff] %v1683_v23  ;;  %v1991_v16 = vrot.slane %v1987_v45, %v1990_v32  ;;  %v1992_v59 = vrot.slane %v1987_v45, %v969_v10  ;;  %v1994_v35 = vrot.slane %v1987_v45, %v1993_v56  ;;  %v2021_v15 = vld [vmem:[#allocation18_spill] sm:$0xff]  ;;  %v2030_v12 = vld [vmem:[#allocation19_spill] sm:$0xff] }
  0xbb   :  { %1978 = vst [vmem:[#allocation32_spill] sm:$0xff] %v1686_v7  ;;  %1979 = vst [vmem:[#allocation33_spill] sm:$0xff] %v1689_v8  ;;  %v756_v36 = vmul.f32 %v1989_v31, %v574_v24  ;;  %v1996_v3 = vrot.slane %v1987_v45, %v1995_v37  ;;  %v1998_v4 = vrot.slane %v1987_v45, %v1997_v50 }
  0xbc   :  { %1980 = vst [vmem:[#allocation34_spill] sm:$0xff] %v1692_v25  ;;  %1982 = vst [vmem:[#allocation35_spill] sm:$0xff] %v1695_v63  ;;  %v757_v33 = vmul.f32 %v1991_v16, %v574_v24  ;;  %v758_v34 = vmul.f32 %v1992_v59, %v574_v24  ;;  %v759_v54 = vmul.f32 %v1994_v35, %v574_v24 }
  0xbd   :  { %1983 = vst [vmem:[#allocation36_spill] sm:$0xff] %v1698_v28  ;;  %1984 = vst [vmem:[#allocation37_spill] sm:$0xff] %v1701_v29  ;;  %v760_v38 = vmul.f32 %v1996_v3, %v574_v24  ;;  %v761_v13 = vmul.f32 %v1998_v4, %v574_v24  ;;  %v2000_v2 = vrot.slane %v1987_v45, %v1999_v14  ;;  %v2012_v29 = vld [vmem:[#allocation17_spill] sm:$0xff] }
  0xbe   :  { %1985 = vst [vmem:[#allocation38_spill] sm:$0xff] %v1704_v60  ;;  %1986 = vst [vmem:[#allocation39_spill] sm:$0xff] %v1707_v58  ;;  %v2002_v19 = vrot.slane %v1987_v45, %v2001_v61  ;;  %v2004_v22 = vrot.slane %v2003_v21, %v1988_v30  ;;  %v2005_v31 = vrot.slane %v2003_v21, %v1990_v32 }
  0xbf   :  { %v762_v6 = vmul.f32 %v2000_v2, %v574_v24  ;;  %v2006_v59 = vrot.slane %v2003_v21, %v969_v10  ;;  %v2007_v3 = vrot.slane %v2003_v21, %v1993_v56  ;;  %v2008_v45 = vrot.slane %v2003_v21, %v1995_v37 }
  0xc0   :  { %v763_v20 = vmul.f32 %v2002_v19, %v574_v24  ;;  %v764_v26 = vmul.f32 %v2004_v22, %v574_v24  ;;  %v765_v16 = vmul.f32 %v2005_v31, %v574_v24  ;;  %v2009_v19 = vrot.slane %v2003_v21, %v1997_v50 }
  0xc1   :  { %v766_v35 = vmul.f32 %v2006_v59, %v574_v24  ;;  %v767_v4 = vmul.f32 %v2007_v3, %v574_v24  ;;  %v768_v2 = vmul.f32 %v2008_v45, %v574_v24  ;;  %v2010_v58 = vrot.slane %v2003_v21, %v1999_v14 }
  0xc2   :  { %v769_v22 = vmul.f32 %v2009_v19, %v574_v24  ;;  %v2011_v60 = vrot.slane %v2003_v21, %v2001_v61  ;;  %v2013_v28 = vrot.slane %v2012_v29, %v1988_v30  ;;  %v2014_v63 = vrot.slane %v2012_v29, %v1990_v32 }
  0xc3   :  { %v770_v31 = vmul.f32 %v2010_v58, %v574_v24  ;;  %v2015_v25 = vrot.slane %v2012_v29, %v969_v10  ;;  %v2016_v8 = vrot.slane %v2012_v29, %v1993_v56  ;;  %v2017_v21 = vrot.slane %v2012_v29, %v1995_v37 }
  0xc4   :  { %v771_v59 = vmul.f32 %v2011_v60, %v574_v24  ;;  %v772_v3 = vmul.f32 %v2013_v28, %v574_v24  ;;  %v773_v45 = vmul.f32 %v2014_v63, %v574_v24  ;;  %v2018_v7 = vrot.slane %v2012_v29, %v1997_v50 }
  0xc5   :  { %v774_v19 = vmul.f32 %v2015_v25, %v574_v24  ;;  %v775_v58 = vmul.f32 %v2016_v8, %v574_v24  ;;  %v776_v60 = vmul.f32 %v2017_v21, %v574_v24  ;;  %v2019_v23 = vrot.slane %v2012_v29, %v1999_v14 }
  0xc6   :  { %v777_v28 = vmul.f32 %v2018_v7, %v574_v24  ;;  %v2020_v55 = vrot.slane %v2012_v29, %v2001_v61  ;;  %v2022_v52 = vrot.slane %v2021_v15, %v1988_v30  ;;  %v2023_v49 = vrot.slane %v2021_v15, %v1990_v32 }
  0xc7   :  { %v778_v63 = vmul.f32 %v2019_v23, %v574_v24  ;;  %v2024_v17 = vrot.slane %v2021_v15, %v969_v10  ;;  %v2025_v46 = vrot.slane %v2021_v15, %v1993_v56  ;;  %v2026_v29 = vrot.slane %v2021_v15, %v1995_v37 }
  0xc8   :  { %v779_v25 = vmul.f32 %v2020_v55, %v574_v24  ;;  %v780_v8 = vmul.f32 %v2022_v52, %v574_v24  ;;  %v781_v21 = vmul.f32 %v2023_v49, %v574_v24  ;;  %v2027_v5 = vrot.slane %v2021_v15, %v1997_v50 }
  0xc9   :  { %v782_v7 = vmul.f32 %v2024_v17, %v574_v24  ;;  %v783_v23 = vmul.f32 %v2025_v46, %v574_v24  ;;  %v784_v55 = vmul.f32 %v2026_v29, %v574_v24  ;;  %v2028_v1 = vrot.slane %v2021_v15, %v1999_v14 }
  0xca   :  { %v785_v52 = vmul.f32 %v2027_v5, %v574_v24  ;;  %v2029_v62 = vrot.slane %v2021_v15, %v2001_v61  ;;  %v2031_v56 = vrot.slane %v2030_v12, %v1988_v30  ;;  %v2032_v37 = vrot.slane %v2030_v12, %v1990_v32 }
  0xcb   :  { %v786_v49 = vmul.f32 %v2028_v1, %v574_v24  ;;  %v2033_v50 = vrot.slane %v2030_v12, %v969_v10  ;;  %v791_v11 = vadd.f32 %v756_v36, %v1605_v39  ;;  %v792_v1 = vadd.f32 %v757_v33, %v1608_v40  ;;  %v2041_v33 = vld [vmem:[#allocation27_spill] sm:$0xff] }
  0xcc   :  { %v787_v17 = vmul.f32 %v2029_v62, %v574_v24  ;;  %v788_v46 = vmul.f32 %v2031_v56, %v574_v24  ;;  %v789_v29 = vmul.f32 %v2032_v37, %v574_v24  ;;  %v793_v14 = vadd.f32 %v758_v34, %v1611_v41 }
  0xcd   :  { %v790_v5 = vmul.f32 %v2033_v50, %v574_v24  ;;  %v794_v62 = vadd.f32 %v759_v54, %v1614_v18  ;;  %v795_v15 = vadd.f32 %v760_v38, %v1617_v42  ;;  %v796_v30 = vadd.f32 %v761_v13, %v1620_v43  ;;  %826 = vst [vmem:[#allocation5] sm:$0xff] %v791_v11  ;;  %v2034_v43 = vld [vmem:[#allocation20_spill] sm:$0xff]  ;;  %v2039_v24 = vld [vmem:[#allocation25_spill] sm:$0xff] }
  0xce   :  { %v797_v61 = vadd.f32 %v762_v6, %v1623_v44  ;;  %v798_v32 = vadd.f32 %v763_v20, %v1626_v47  ;;  %v799_v56 = vadd.f32 %v764_v26, %v1629_v51  ;;  %v800_v10 = vadd.f32 %v765_v16, %v1632_v53  ;;  %827 = vst [vmem:[#allocation5 + $0x8] sm:$0xff] %v792_v1  ;;  %v2035_v47 = vld [vmem:[#allocation21_spill] sm:$0xff]  ;;  %v2036_v53 = vld [vmem:[#allocation22_spill] sm:$0xff]  ;;  %v2038_v11 = vld [vmem:[#allocation24_spill] sm:$0xff] }
  0xcf   :  { %v801_v39 = vadd.f32 %v766_v35, %v1635_v48  ;;  %v802_v40 = vadd.f32 %v767_v4, %v1638_v27  ;;  %v803_v41 = vadd.f32 %v768_v2, %v1641_v0  ;;  %828 = vst [vmem:[#allocation5 + $0x10] sm:$0xff] %v793_v14  ;;  %829 = vst [vmem:[#allocation5 + $0x18] sm:$0xff] %v794_v62  ;;  %v2037_v27 = vld [vmem:[#allocation23_spill] sm:$0xff]  ;;  %v2042_v54 = vld [vmem:[#allocation28_spill] sm:$0xff] }
  0xd0   :  { %830 = vst [vmem:[#allocation5 + $0x20] sm:$0xff] %v795_v15  ;;  %v804_v18 = vadd.f32 %v769_v22, %v1644_v57  ;;  %v805_v42 = vadd.f32 %v770_v31, %v1647_v9  ;;  %v806_v44 = vadd.f32 %v771_v59, %v2034_v43  ;;  %v807_v51 = vadd.f32 %v772_v3, %v2035_v47  ;;  %v2040_v57 = vld [vmem:[#allocation26_spill] sm:$0xff]  ;;  %v2043_v13 = vld [vmem:[#allocation29_spill] sm:$0xff]  ;;  %v2045_v16 = vld [vmem:[#allocation31_spill] sm:$0xff] }
  0xd1   :  { %831 = vst [vmem:[#allocation5 + $0x28] sm:$0xff] %v796_v30  ;;  %832 = vst [vmem:[#allocation5 + $0x30] sm:$0xff] %v797_v61  ;;  %v808_v48 = vadd.f32 %v773_v45, %v2036_v53  ;;  %v809_v0 = vadd.f32 %v774_v19, %v2037_v27  ;;  %v810_v12 = vadd.f32 %v775_v58, %v2038_v11  ;;  %v2044_v20 = vld [vmem:[#allocation30_spill] sm:$0xff]  ;;  %v2046_v4 = vld [vmem:[#allocation32_spill] sm:$0xff] }
  0xd2   :  { %833 = vst [vmem:[#allocation5 + $0x38] sm:$0xff] %v798_v32  ;;  %834 = vst [vmem:[#allocation5 + $0x40] sm:$0xff] %v799_v56  ;;  %v811_v36 = vadd.f32 %v776_v60, %v2039_v24  ;;  %v812_v9 = vadd.f32 %v777_v28, %v2040_v57  ;;  %v813_v34 = vadd.f32 %v778_v63, %v2041_v33  ;;  %v2047_v22 = vld [vmem:[#allocation33_spill] sm:$0xff]  ;;  %v2048_v59 = vld [vmem:[#allocation34_spill] sm:$0xff] }
  0xd3   :  { %835 = vst [vmem:[#allocation5 + $0x48] sm:$0xff] %v800_v10  ;;  %836 = vst [vmem:[#allocation5 + $0x50] sm:$0xff] %v801_v39  ;;  %v814_v38 = vadd.f32 %v779_v25, %v2042_v54  ;;  %v815_v6 = vadd.f32 %v780_v8, %v2043_v13  ;;  %v816_v26 = vadd.f32 %v781_v21, %v2044_v20  ;;  %v2049_v45 = vld [vmem:[#allocation35_spill] sm:$0xff]  ;;  %v2050_v58 = vld [vmem:[#allocation36_spill] sm:$0xff] }
  0xd4   :  { %837 = vst [vmem:[#allocation5 + $0x58] sm:$0xff] %v802_v40  ;;  %838 = vst [vmem:[#allocation5 + $0x60] sm:$0xff] %v803_v41  ;;  %v817_v35 = vadd.f32 %v782_v7, %v2045_v16  ;;  %v818_v2 = vadd.f32 %v783_v23, %v2046_v4  ;;  %v819_v31 = vadd.f32 %v784_v55, %v2047_v22  ;;  %v2051_v28 = vld [vmem:[#allocation37_spill] sm:$0xff]  ;;  %v2052_v25 = vld [vmem:[#allocation38_spill] sm:$0xff] }
  0xd5   :  { %839 = vst [vmem:[#allocation5 + $0x68] sm:$0xff] %v804_v18  ;;  %840 = vst [vmem:[#allocation5 + $0x70] sm:$0xff] %v805_v42  ;;  %v820_v3 = vadd.f32 %v785_v52, %v2048_v59  ;;  %v821_v19 = vadd.f32 %v786_v49, %v2049_v45  ;;  %v822_v60 = vadd.f32 %v787_v17, %v2050_v58  ;;  %v2053_v21 = vld [vmem:[#allocation39_spill] sm:$0xff] }
  0xd6   :  { %841 = vst [vmem:[#allocation5 + $0x78] sm:$0xff] %v806_v44  ;;  %842 = vst [vmem:[#allocation5 + $0x80] sm:$0xff] %v807_v51  ;;  %v823_v63 = vadd.f32 %v788_v46, %v2051_v28  ;;  %v824_v8 = vadd.f32 %v789_v29, %v2052_v25  ;;  %v825_v7 = vadd.f32 %v790_v5, %v2053_v21 }
  0xd7   :  { %843 = vst [vmem:[#allocation5 + $0x88] sm:$0xff] %v808_v48  ;;  %844 = vst [vmem:[#allocation5 + $0x90] sm:$0xff] %v809_v0 }
  0xd8   :  { %845 = vst [vmem:[#allocation5 + $0x98] sm:$0xff] %v810_v12  ;;  %846 = vst [vmem:[#allocation5 + $0xa0] sm:$0xff] %v811_v36 }
  0xd9   :  { %847 = vst [vmem:[#allocation5 + $0xa8] sm:$0xff] %v812_v9  ;;  %848 = vst [vmem:[#allocation5 + $0xb0] sm:$0xff] %v813_v34 }
  0xda   :  { %849 = vst [vmem:[#allocation5 + $0xb8] sm:$0xff] %v814_v38  ;;  %850 = vst [vmem:[#allocation5 + $0xc0] sm:$0xff] %v815_v6 }
  0xdb   :  { %851 = vst [vmem:[#allocation5 + $0xc8] sm:$0xff] %v816_v26  ;;  %852 = vst [vmem:[#allocation5 + $0xd0] sm:$0xff] %v817_v35 }
  0xdc   :  { %853 = vst [vmem:[#allocation5 + $0xd8] sm:$0xff] %v818_v2  ;;  %854 = vst [vmem:[#allocation5 + $0xe0] sm:$0xff] %v819_v31 }
  0xdd   :  { %855 = vst [vmem:[#allocation5 + $0xe8] sm:$0xff] %v820_v3  ;;  %856 = vst [vmem:[#allocation5 + $0xf0] sm:$0xff] %v821_v19 }
  0xde   :  { %857 = vst [vmem:[#allocation5 + $0xf8] sm:$0xff] %v822_v60  ;;  %858 = vst [vmem:[#allocation5 + $0x100] sm:$0xff] %v823_v63 }
  0xdf   :  { %859 = vst [vmem:[#allocation5 + $0x108] sm:$0xff] %v824_v8  ;;  %860 = vst [vmem:[#allocation5 + $0x110] sm:$0xff] %v825_v7 }
  0xe0   :  { %916 = shalt.err (!%p913_p9)
}
  0xe1   :  { %870 = dma.vmem_to_hbm [thread:$0]  %s868_s1, 4480, %s1855_s3, [#allocation4]  }
  0xe2   :  { %927 = dma.done.wait [#allocation4], 4480  }
  0xe3   :  { %928 = vsyncadd [#allocation4], 4294962816 }
  0xe4   :  { %874 = vsyncpa [#allocation3], 1 }
  0xe5   :  { %875 = vsyncpa [#allocation4], 1 }

</bundles_post_ra>
